<compile_context>
chip_gen: v6e
topology: v6e:2x2x1
jax: 0.10.0
libtpu: 0.0.40
codegen_flags: <defaults>
</compile_context>

<pallas_src>
import jax
import jax.numpy as jnp
from jax.experimental import pallas as pl
from jax.experimental.pallas import tpu as pltpu


# ---------------------------------------------------------------------------
# Pallas kernel: per-row (= per batch*channel) elementwise masking.
# ---------------------------------------------------------------------------
def _channel_drop_kernel(x_ref, m_ref, o_ref):
    # x_ref: (tile_r, tile_hw); m_ref: (tile_r, 1), already in x.dtype.
    # Single broadcast multiply; VPU has huge slack (vld/vst bound).
    o_ref[...] = x_ref[...] * m_ref[...]


def _round_up(x, m):
    return ((x + m - 1) // m) * m


def _select_tiles(R, HW, itemsize, target_bytes=2 << 20):
    """Pick ~2 MiB, lane-dense blocks; dtype- and generation-safe."""
    sub = max(8, 32 // itemsize)          # packed sublane multiple (8/16/32)
    lane = 128
    row_bytes = HW * itemsize

    if sub * row_bytes <= target_bytes:
        # Common case: whole rows per block -> zero lane padding.
        tile_hw = HW
        tile_r = max(sub, (target_bytes // row_bytes) // sub * sub)
    else:
        # Very large spatial dim: tile the lane axis in multiples of 128.
        tile_r = sub
        tile_hw = max(lane, (target_bytes // (sub * itemsize)) // lane * lane)
        tile_hw = min(tile_hw, _round_up(HW, lane))

    # Don't make a row block bigger than (rounded-up) R.
    tile_r = max(sub, min(tile_r, _round_up(R, sub)))

    # v7x megacore: keep >= 2 row blocks when there are enough rows so both
    # TensorCores get work, rather than collapsing to a 1-block grid.
    if pl.cdiv(R, tile_r) < 2 and R > sub:
        tile_r = max(sub, _round_up(pl.cdiv(R, 2), sub))

    return tile_r, tile_hw


def channel_drop_apply(x_nchw, mask_bc):
    """Multiply NCHW input by a (B, C) channel mask using a Pallas kernel."""
    B, C, H, W = x_nchw.shape
    HW = H * W
    R = B * C
    itemsize = jnp.dtype(x_nchw.dtype).itemsize

    tile_r, tile_hw = _select_tiles(R, HW, itemsize)

    # Row-major NCHW -> (B*C, H*W) is a pure view (no data movement).
    x_flat = x_nchw.reshape(R, HW)
    m = mask_bc.astype(x_nchw.dtype).reshape(R, 1)  # pre-cast: no in-kernel convert

    grid = (pl.cdiv(R, tile_r), pl.cdiv(HW, tile_hw))

    cost = pl.CostEstimate(
        flops=R * HW,
        transcendentals=0,
        bytes_accessed=2 * R * HW * itemsize + R * itemsize,
    )

    out_flat = pl.pallas_call(
        _channel_drop_kernel,
        out_shape=jax.ShapeDtypeStruct((R, HW), x_nchw.dtype),
        grid_spec=pltpu.PrefetchScalarGridSpec(
            num_scalar_prefetch=0,
            grid=grid,
            in_specs=[
                # ~2 MiB lane-dense data tile; trailing partial blocks are
                # masked by Pallas (no wrapper pad / slice needed).
                pl.BlockSpec((tile_r, tile_hw), lambda i, j: (i, j)),
                # Tiny per-row mask column, reused across the HW grid axis.
                pl.BlockSpec((tile_r, 1), lambda i, j: (i, 0)),
            ],
            out_specs=pl.BlockSpec((tile_r, tile_hw), lambda i, j: (i, j)),
        ),
        compiler_params=pltpu.CompilerParams(
            dimension_semantics=("parallel", "parallel"),
            vmem_limit_bytes=32 << 20,   # safe on v5e/v6e/v7x; ~8 MiB in flight
        ),
        cost_estimate=cost,
    )(x_flat, m)

    return out_flat.reshape(B, C, H, W)


# ---------------------------------------------------------------------------
# Mask construction (glue, plain JAX): mirrors channel_drop._make_mask.
# ---------------------------------------------------------------------------
def make_mask(key, batch_size, in_channels, protected_channels,
              out_nonzero_channels, groupby):
    assert in_channels % groupby == 0
    groups = in_channels // groupby
    mask = jnp.zeros((batch_size, groups), dtype=jnp.float32)

    if protected_channels is not None:
        prot_idx = jnp.asarray(protected_channels, dtype=jnp.int32)
        mask = mask.at[:, prot_idx].set(1.0)
        protected = list(protected_channels)
    else:
        protected = []

    not_protected = [i for i in range(groups) if i not in protected]
    num_channels_to_add = out_nonzero_channels - len(protected)
    assert num_channels_to_add >= 0, (
        "out_nonzero_channels must be >= len(protected_channels)")

    if num_channels_to_add:
        not_prot_arr = jnp.asarray(not_protected, dtype=jnp.int32)
        keys = jax.random.split(key, batch_size)

        def choose(k):
            # choice without replacement == take first k of a permutation
            return jax.random.permutation(k, not_prot_arr)[:num_channels_to_add]

        chosen = jax.vmap(choose)(keys)  # (batch, num_channels_to_add)
        mask = jax.vmap(lambda m, c: m.at[c].set(1.0))(mask, chosen)

    # expand each group entry to `groupby` consecutive channels
    mask = jnp.repeat(mask, groupby, axis=1)  # (batch, in_channels)
    return mask


# ---------------------------------------------------------------------------
# Module-equivalent wrapper (forward only; backward is just grad * mask).
# ---------------------------------------------------------------------------
class ChannelDrop:
    def __init__(self, in_channels, protected_channels=None,
                 out_nonzero_channels=1, groupby=1):
        self.in_channels = in_channels
        self.protected_channels = protected_channels
        self.out_nonzero_channels = out_nonzero_channels
        self.groupby = groupby
        self.training = True

    def __call__(self, x, key):
        if not self.training:
            return x
        mask = make_mask(key, x.shape[0], self.in_channels,
                         self.protected_channels, self.out_nonzero_channels,
                         self.groupby)
        return channel_drop_apply(x, mask)


if __name__ == "__main__":
    key = jax.random.PRNGKey(0)
    k_x, k_mask, k_x2, k_mask2, k_x3, k_mask3 = jax.random.split(key, 6)

    # --- primary check: aligned shapes ---
    B, C, H, W = 2, 4, 16, 16
    x = jax.random.normal(k_x, (B, C, H, W), dtype=jnp.float32)

    module = ChannelDrop(in_channels=C, protected_channels=[0],
                         out_nonzero_channels=2, groupby=1)
    out = module(x, k_mask)
    out = jax.block_until_ready(out)

    ref_mask = make_mask(k_mask, B, C, [0], 2, 1).reshape(B, C, 1, 1)
    ref = x * ref_mask
    assert out.shape == x.shape
    assert jnp.allclose(out, ref), "mismatch vs reference (aligned case)"

    # --- ragged check: H*W=196, B*C=6 exercises partial trailing blocks ---
    B2, C2, H2, W2 = 2, 3, 14, 14
    x2 = jax.random.normal(k_x2, (B2, C2, H2, W2), dtype=jnp.float32)
    mask2 = make_mask(k_mask2, B2, C2, None, 2, 1)
    out2 = jax.block_until_ready(channel_drop_apply(x2, mask2))
    ref2 = x2 * mask2.reshape(B2, C2, 1, 1)
    assert jnp.allclose(out2, ref2), "mismatch vs reference (ragged case)"

    # --- dtype check: bf16 exercises packed-sublane (16) tile rounding ---
    B3, C3, H3, W3 = 2, 4, 14, 14
    x3 = jax.random.normal(k_x3, (B3, C3, H3, W3)).astype(jnp.bfloat16)
    mask3 = make_mask(k_mask3, B3, C3, [1], 2, 2)
    out3 = jax.block_until_ready(channel_drop_apply(x3, mask3))
    ref3 = x3 * mask3.astype(jnp.bfloat16).reshape(B3, C3, 1, 1)
    assert jnp.allclose(out3.astype(jnp.float32), ref3.astype(jnp.float32)), \
        "mismatch vs reference (bf16 case)"

    print("KERNEL_OK")
</pallas_src>

<mosaic_0001>
module attributes {stable_mosaic.version = 11 : i64} {
  func.func @_channel_drop_kernel(%arg0: i32, %arg1: i32, %arg2: memref<8x256xf32, #tpu.memory_space<vmem>>, %arg3: memref<8x1xf32, #tpu.memory_space<vmem>>, %arg4: memref<8x256xf32, #tpu.memory_space<vmem>>) attributes {dimension_semantics = [#tpu.dimension_semantics<parallel>, #tpu.dimension_semantics<parallel>], iteration_bounds = array<i64: 1, 1>, scalar_prefetch = 0 : i64, scratch_operands = 0 : i64, tpu.core_type = #tpu.core_type<tc>, window_params = [{transform_indices = @transform_0, window_bounds = array<i64: 8, 256>}, {transform_indices = @transform_1, window_bounds = array<i64: 8, 1>}, {transform_indices = @transform_2, window_bounds = array<i64: 8, 256>}]} {
    %c0 = arith.constant 0 : index
    %c0_0 = arith.constant 0 : index
    %0 = vector.load %arg2[%c0, %c0_0] : memref<8x256xf32, #tpu.memory_space<vmem>>, vector<8x256xf32>
    %c0_1 = arith.constant 0 : index
    %c0_2 = arith.constant 0 : index
    %1 = vector.load %arg3[%c0_1, %c0_2] : memref<8x1xf32, #tpu.memory_space<vmem>>, vector<8x1xf32>
    %2 = vector.broadcast %1 : vector<8x1xf32> to vector<8x256xf32>
    %3 = arith.mulf %0, %2 : vector<8x256xf32>
    %c0_3 = arith.constant 0 : index
    %c0_4 = arith.constant 0 : index
    %4 = vector.load %arg4[%c0_3, %c0_4] : memref<8x256xf32, #tpu.memory_space<vmem>>, vector<8x256xf32>
    tpu.vector_store %arg4[%c0_3, %c0_4], %3 {strides = array<i32>} : memref<8x256xf32, #tpu.memory_space<vmem>>, vector<8x256xf32>,
    return
  }
  func.func @transform_0(%arg0: i32, %arg1: i32) -> (i32, i32) {
    %c0_i32 = arith.constant 0 : i32
    return %arg0, %arg1 : i32, i32
  }
  func.func @transform_1(%arg0: i32, %arg1: i32) -> (i32, i32) {
    %c0_i32 = arith.constant 0 : i32
    %c0_i32_0 = arith.constant 0 : i32
    return %arg0, %c0_i32 : i32, i32
  }
  func.func @transform_2(%arg0: i32, %arg1: i32) -> (i32, i32) {
    %c0_i32 = arith.constant 0 : i32
    return %arg0, %arg1 : i32, i32
  }
}

</mosaic_0001>

<bundles_post_ra>
// kernel: tpu_custom_call.1
= control target key start
LH: loop header
LB: loop body
LE: loop exit
PB: predicated region body
PF: predicated region fallthrough
CT: control target
= control target key end

     0   :  { %7 = vsyncpa [#allocation3], 0  ;;  %s126_s0 = inlined_call_operand.hbm [shape: f32[8,256], index: 0, kind: input, shape index: {}]   ;;  %s127_s1 = inlined_call_operand.vmem [shape: f32[8,1], index: 1, kind: input, shape index: {}]   ;;  %s128_s2 = inlined_call_operand.hbm [shape: f32[8,256], index: 2, kind: output, shape index: {}]  }
   0x1   :  { %8 = vsyncpa [#allocation4], 0  ;;  %s99_s9 = smov [#allocation2]  }
   0x2   :  { %s15_s10 = sshll.u32 %s99_s9, 4  ;;  %s16_s10 = int_to_ptr.vmem [resolvable:$true] %s15_s10 }
   0x3   :  { %s63_s11 = scalar_lea.vmem %s16_s10, 256  ;;  %p68_p1 = scmp.lt.s32.totalorder %s16_s10, %s16_s10 }
   0x4   :  { %p64_p0 = scmp.ne.s32.totalorder %s16_s10, %s63_s11  ;;  %p69_p2 = scmp.lt.s32.totalorder %s63_s11, %s63_s11 }
   0x6   :  { %p70_p3 = por %p69_p2, %p68_p1 }
   0x8   :  { %p71_p4 = pnand %p70_p3, %p64_p0 }
   0xa   :  { %74 = shalt.err (!%p71_p4)
}
   0xb   :  { %18 = dma.hbm_to_vmem [thread:$0]  %s126_s0, 256, %s16_s10, [#allocation3]  }
   0xc   :  { %95 = dma.done.wait [#allocation3], 256  }
   0xd   :  { %96 = vsyncadd [#allocation3], 4294967040  ;;  %v100_v0 = vmov 0   ;;  %v26_v1 = vld [vmem:[%s127_s1] sm:$0xff]  ;;  %v25_v3 = vld [vmem:[#allocation2 + $0x8] sm:$0xff]  ;;  %s101_s16 = smov [#allocation5]  }
   0xe   :  { %54 = vset.pattern.permute.xlu0 %v100_v0  ;;  %v24_v2 = vld [vmem:[#allocation2] sm:$0xff]  ;;  %s42_s17 = sshll.u32 %s101_s16, 4  ;;  %s43_s17 = int_to_ptr.vmem [resolvable:$true] %s42_s17 }
   0xf   :  { %29 = vperm.xlu0 %54, %v26_v1   ;;  %s75_s0 = scalar_lea.vmem %s43_s17, 256  ;;  %p80_p6 = scmp.lt.s32.totalorder %s43_s17, %s43_s17 }
  0x10   :  { %p76_p5 = scmp.ne.s32.totalorder %s43_s17, %s75_s0  ;;  %p81_p7 = scmp.lt.s32.totalorder %s75_s0, %s75_s0 }
  0x12   :  { %p82_p8 = por %p81_p7, %p80_p6 }
  0x14   :  { %p83_p9 = pnand %p82_p8, %p76_p5 }
  0x8a   :  { %v30_v4 = vpop.permute.xlu0 %29 }
  0x8b   :  { %v32_v5 = vmul.f32 %v30_v4, %v24_v2  ;;  %v33_v6 = vmul.f32 %v30_v4, %v25_v3 }
  0x8d   :  { %34 = vst [vmem:[#allocation5] sm:$0xff] %v32_v5  ;;  %35 = vst [vmem:[#allocation5 + $0x8] sm:$0xff] %v33_v6 }
  0x8e   :  { %86 = shalt.err (!%p83_p9)
}
  0x8f   :  { %45 = dma.vmem_to_hbm [thread:$0]  %s43_s17, 256, %s128_s2, [#allocation4]  }
  0x90   :  { %97 = dma.done.wait [#allocation4], 256  }
  0x91   :  { %98 = vsyncadd [#allocation4], 4294967040 }
  0x92   :  { %49 = vsyncpa [#allocation3], 1 }
  0x93   :  { %50 = vsyncpa [#allocation4], 1 }

</bundles_post_ra>
